<compile_context>
chip_gen: v6e
topology: v6e:2x2x1
jax: 0.10.0
libtpu: 0.0.40
codegen_flags: <defaults>
</compile_context>

<pallas_src>
import functools

import jax
import jax.numpy as jnp
from jax.experimental import pallas as pl
from jax.experimental.pallas import tpu as pltpu


def _conv_gemm_kernel(w_ref, b_ref, p_ref, o_ref, *, n_chunk):
    """out(12, TN) = W(12, 192) @ P(192, TN) + b(12, 1), chunked along N.

    Chunking bounds the live f32 accumulator to (12, n_chunk) so the epilogue
    (bias add + cast + store) never spills vregs at large TN, and every store
    is a full-width lane-dense `vst`.
    """
    w = w_ref[...]                       # (12, 192) resident
    b = b_ref[...]                       # (12, 1)   resident
    n = o_ref.shape[1]
    for c0 in range(0, n, n_chunk):      # static python loop (n, n_chunk static)
        c1 = min(c0 + n_chunk, n)
        acc = jnp.dot(w, p_ref[:, c0:c1], preferred_element_type=jnp.float32)
        o_ref[:, c0:c1] = (acc + b).astype(o_ref.dtype)


def _pick_col_tile(m, target):
    """Lane-dense column tile for the GEMM's N axis (N = B*Ho*Wo).

    - small M: a single full-width block (full dim satisfies the (8,128) rule)
    - larger M: multiples of 128, as large as possible <= target, with an even
      tile count (>=4 once M >= 2048) so v7x's two TensorCores each get >=2
      pipelined steps; the extra ~0.35us/step on single-TC v5e/v6e is noise at
      these block sizes.
    """
    if m <= 512:
        return m
    n_tiles = pl.cdiv(m, target)
    n_tiles = max(n_tiles, 4 if m >= 2048 else 2)
    if n_tiles % 2:
        n_tiles += 1
    tn = pl.cdiv(pl.cdiv(m, n_tiles), 128) * 128
    return min(max(tn, 128), target)


def _conv_as_gemm(w_mat, b_col, pt, *, target_cols=8192):
    """w_mat: (Cout, K), b_col: (Cout, 1), pt: (K, M) -> (Cout, M)."""
    K, M = pt.shape
    Cout = w_mat.shape[0]
    tn = _pick_col_tile(M, target_cols)
    n_chunk = min(tn, 1024)
    grid = (pl.cdiv(M, tn),)

    cost = pl.CostEstimate(
        flops=2 * Cout * K * M,
        transcendentals=0,
        bytes_accessed=(K * M + Cout * M + Cout * K + Cout) * 4,
    )

    return pl.pallas_call(
        functools.partial(_conv_gemm_kernel, n_chunk=n_chunk),
        out_shape=jax.ShapeDtypeStruct((Cout, M), pt.dtype),
        grid_spec=pltpu.PrefetchScalarGridSpec(
            num_scalar_prefetch=0,
            grid=grid,
            in_specs=[
                pl.BlockSpec((Cout, K), lambda i: (0, 0)),   # weights (resident)
                pl.BlockSpec((Cout, 1), lambda i: (0, 0)),   # bias    (resident)
                pl.BlockSpec((K, tn), lambda i: (0, i)),     # patch columns
            ],
            out_specs=pl.BlockSpec((Cout, tn), lambda i: (0, i)),
        ),
        compiler_params=pltpu.CompilerParams(
            dimension_semantics=("parallel",),
            vmem_limit_bytes=32 * 1024 * 1024,   # ~13 MiB used at tn=8192 (2x buffered)
        ),
        cost_estimate=cost,
    )(w_mat, b_col, pt)


def cs_downsample_x4(x, weight, bias, *, target_cols=8192):
    """x: (B, 3, H, W) float32 NCHW.  Returns (B, 3, H/4, W/4)."""
    B, Cin, H, W = x.shape
    assert Cin == 3 and H % 8 == 0 and W % 8 == 0
    Ho, Wo = H // 8, W // 8
    Cout = weight.shape[0]          # 12 = 3 * 2 * 2
    K = Cin * 8 * 8                 # 192
    M = B * Ho * Wo

    # im2col for k=s=8 (non-overlapping), K-major so the large spatial axis
    # M = B*Ho*Wo lands on the TPU lane dimension inside the kernel.
    # (B,3,H,W) -> (B,3,Ho,8,Wo,8)   [free row-major reshape]
    # -> (c,kh,kw,b,ho,wo) -> (192, M)  [one fused XLA transpose pass; see
    #                                    TODO(synk) at top of file]
    pt = x.reshape(B, Cin, Ho, 8, Wo, 8).transpose(1, 3, 5, 0, 2, 4).reshape(K, M)

    # weight (Cout, Cin, 8, 8) -> (Cout, K), matching the (c, kh, kw) flatten order
    w_mat = weight.reshape(Cout, K)
    b_col = bias.reshape(Cout, 1)

    # hot path: lane-dense Pallas GEMM + bias
    conv = _conv_as_gemm(w_mat, b_col, pt, target_cols=target_cols)  # (12, M)

    # 'b (c a1 a2) h w -> b c (h a1) (w a2)', a1=a2=2, c=3.
    # conv rows are (c,a1,a2), cols are (b,ho,wo); this tensor is 1/16 of the
    # input bytes so the rearrange pass stays as cheap XLA glue.
    y = conv.reshape(3, 2, 2, B, Ho, Wo).transpose(3, 0, 4, 1, 5, 2)
    return y.reshape(B, 3, 2 * Ho, 2 * Wo)


def _reference(x, weight, bias):
    """Pure-JAX reference (NCHW conv + einops-style rearrange)."""
    out = jax.lax.conv_general_dilated(
        x, weight, window_strides=(8, 8), padding="VALID",
        dimension_numbers=("NCHW", "OIHW", "NCHW"))
    out = out + bias.reshape(1, -1, 1, 1)
    B, _, Ho, Wo = out.shape
    y = out.reshape(B, 3, 2, 2, Ho, Wo).transpose(0, 1, 4, 2, 5, 3)
    return y.reshape(B, 3, 2 * Ho, 2 * Wo)


if __name__ == "__main__":
    key = jax.random.PRNGKey(0)
    k_x, k_w, k_b = jax.random.split(key, 3)

    # deterministic parameter init (shapes from nn.Conv2d(3, 12, 8, stride=8))
    fan_in = 3 * 8 * 8
    bound = 1.0 / (fan_in ** 0.5)
    weight = jax.random.uniform(k_w, (12, 3, 8, 8), jnp.float32, -bound, bound)
    bias = jax.random.uniform(k_b, (12,), jnp.float32, -bound, bound)

    fwd = jax.jit(cs_downsample_x4)

    # 1) single-block path (M = 512 -> one full-width tile)
    x1 = jax.random.normal(k_x, (2, 3, 128, 128), dtype=jnp.float32)
    y1 = jax.block_until_ready(fwd(x1, weight, bias))
    r1 = _reference(x1, weight, bias)
    assert y1.shape == (2, 3, 32, 32), y1.shape
    assert jnp.allclose(y1, r1, atol=5e-4, rtol=5e-4), float(
        jnp.max(jnp.abs(y1 - r1)))

    # 2) multi-block grid with a ragged last tile
    #    (M = 2*18*18 = 648, tn = 384 -> 2 grid steps, last block 264 valid cols)
    x2 = jax.random.normal(jax.random.PRNGKey(1), (2, 3, 144, 144),
                           dtype=jnp.float32)
    y2 = jax.block_until_ready(fwd(x2, weight, bias))
    r2 = _reference(x2, weight, bias)
    assert y2.shape == (2, 3, 36, 36), y2.shape
    assert jnp.allclose(y2, r2, atol=5e-4, rtol=5e-4), float(
        jnp.max(jnp.abs(y2 - r2)))

    print("KERNEL_OK")
</pallas_src>

<mosaic_0001>
module attributes {stable_mosaic.version = 11 : i64} {
  func.func @_conv_gemm_kernel(%arg0: i32, %arg1: memref<12x192xf32, #tpu.memory_space<vmem>>, %arg2: memref<12x1xf32, #tpu.memory_space<vmem>>, %arg3: memref<192x512xf32, #tpu.memory_space<vmem>>, %arg4: memref<12x512xf32, #tpu.memory_space<vmem>>) attributes {dimension_semantics = [#tpu.dimension_semantics<parallel>], iteration_bounds = array<i64: 1>, scalar_prefetch = 0 : i64, scratch_operands = 0 : i64, tpu.core_type = #tpu.core_type<tc>, window_params = [{pipeline_mode = #tpu.pipeline_mode<synchronous>, transform_indices = @transform_0, window_bounds = array<i64: 12, 192>}, {pipeline_mode = #tpu.pipeline_mode<synchronous>, transform_indices = @transform_1, window_bounds = array<i64: 12, 1>}, {transform_indices = @transform_2, window_bounds = array<i64: 192, 512>}, {transform_indices = @transform_3, window_bounds = array<i64: 12, 512>}]} {
    %c0 = arith.constant 0 : index
    %c0_0 = arith.constant 0 : index
    %0 = vector.load %arg1[%c0, %c0_0] : memref<12x192xf32, #tpu.memory_space<vmem>>, vector<12x192xf32>
    %c0_1 = arith.constant 0 : index
    %c0_2 = arith.constant 0 : index
    %1 = vector.load %arg2[%c0_1, %c0_2] : memref<12x1xf32, #tpu.memory_space<vmem>>, vector<12x1xf32>
    %c0_3 = arith.constant 0 : index
    %c0_4 = arith.constant 0 : index
    %2 = vector.load %arg3[%c0_3, %c0_4] : memref<192x512xf32, #tpu.memory_space<vmem>>, vector<192x512xf32>
    %cst = arith.constant dense<0.000000e+00> : vector<12x512xf32>
    %3 = tpu.matmul %0, %2, %cst {dimension_numbers = #tpu.dot_dimension_numbers<[1], [0], [0], [1], [0, 0, 1, 1], [], []>} : vector<12x192xf32>, vector<192x512xf32>, vector<12x512xf32> -> vector<12x512xf32>
    %4 = vector.broadcast %1 : vector<12x1xf32> to vector<12x512xf32>
    %5 = arith.addf %3, %4 : vector<12x512xf32>
    %c0_5 = arith.constant 0 : index
    %c0_6 = arith.constant 0 : index
    %6 = vector.load %arg4[%c0_5, %c0_6] : memref<12x512xf32, #tpu.memory_space<vmem>>, vector<12x512xf32>
    tpu.vector_store %arg4[%c0_5, %c0_6], %5 {strides = array<i32>} : memref<12x512xf32, #tpu.memory_space<vmem>>, vector<12x512xf32>,
    return
  }
  func.func @transform_0(%arg0: i32) -> (i32, i32) {
    %c0_i32 = arith.constant 0 : i32
    %c0_i32_0 = arith.constant 0 : i32
    %c0_i32_1 = arith.constant 0 : i32
    return %c0_i32, %c0_i32_0 : i32, i32
  }
  func.func @transform_1(%arg0: i32) -> (i32, i32) {
    %c0_i32 = arith.constant 0 : i32
    %c0_i32_0 = arith.constant 0 : i32
    %c0_i32_1 = arith.constant 0 : i32
    return %c0_i32, %c0_i32_0 : i32, i32
  }
  func.func @transform_2(%arg0: i32) -> (i32, i32) {
    %c0_i32 = arith.constant 0 : i32
    %c0_i32_0 = arith.constant 0 : i32
    return %c0_i32, %arg0 : i32, i32
  }
  func.func @transform_3(%arg0: i32) -> (i32, i32) {
    %c0_i32 = arith.constant 0 : i32
    %c0_i32_0 = arith.constant 0 : i32
    return %c0_i32, %arg0 : i32, i32
  }
}

</mosaic_0001>

<bundles_post_ra>
// kernel: cs_downsample_x4.1
= control target key start
LH: loop header
LB: loop body
LE: loop exit
PB: predicated region body
PF: predicated region fallthrough
CT: control target
= control target key end

     0   :  { %v305_v3 = vmov 0   ;;  %vm126_vm0 = vcmask 523264   ;;  %s660_s2 = inlined_call_operand.vmem [shape: f32[192,512], index: 2, kind: input, shape index: {}]   ;;  %s661_s0 = inlined_call_operand.vmem [shape: f32[12,192], index: 0, kind: input, shape index: {}]   ;;  %s662_s1 = inlined_call_operand.vmem [shape: f32[12,1], index: 1, kind: input, shape index: {}]   ;;  %s663_s3 = inlined_call_operand.vmem [shape: f32[12,512], index: 3, kind: output, shape index: {}]  }
   0x1   :  { %v81_v0 = vld [vmem:[%s660_s2 + $0x1e8] sm:$0xff]  ;;  %v83_v1 = vld [vmem:[%s660_s2 + $0x1f8] sm:$0xff]  ;;  %v80_v2 = vld [vmem:[%s660_s2 + $0x1e0] sm:$0xff]  ;;  %304 = vset.pattern.permute.xlu0 %v305_v3 }
   0x2   :  { %133 = vmatprep.subr.mxu0 %v81_v0  ;;  %210 = vmatprep.subr.mxu1 %v83_v1  ;;  %v82_v4 = vld [vmem:[%s660_s2 + $0x1f0] sm:$0xff]  ;;  %v77_v5 = vld [vmem:[%s660_s2 + $0x1c8] sm:$0xff]  ;;  %v79_v6 = vld [vmem:[%s660_s2 + $0x1d8] sm:$0xff] }
   0x3   :  { %134 = vmatpush1.msra.mxu0 %v80_v2  ;;  %211 = vmatpush1.msra.mxu1 %v82_v4  ;;  %v76_v7 = vld [vmem:[%s660_s2 + $0x1c0] sm:$0xff]  ;;  %v78_v8 = vld [vmem:[%s660_s2 + $0x1d0] sm:$0xff]  ;;  %v73_v9 = vld [vmem:[%s660_s2 + $0x1a8] sm:$0xff] }
   0x4   :  { %135 = vmatprep.subr.mxu0 %v77_v5  ;;  %212 = vmatprep.subr.mxu1 %v79_v6  ;;  %v75_v10 = vld [vmem:[%s660_s2 + $0x1b8] sm:$0xff]  ;;  %v72_v11 = vld [vmem:[%s660_s2 + $0x1a0] sm:$0xff]  ;;  %v74_v12 = vld [vmem:[%s660_s2 + $0x1b0] sm:$0xff] }
   0x5   :  { %136 = vmatpush1.msra.mxu0 %v76_v7  ;;  %213 = vmatpush1.msra.mxu1 %v78_v8  ;;  %v69_v13 = vld [vmem:[%s660_s2 + $0x188] sm:$0xff]  ;;  %v71_v14 = vld [vmem:[%s660_s2 + $0x198] sm:$0xff]  ;;  %v68_v15 = vld [vmem:[%s660_s2 + $0x180] sm:$0xff] }
   0x6   :  { %137 = vmatprep.subr.mxu0 %v73_v9  ;;  %214 = vmatprep.subr.mxu1 %v75_v10  ;;  %v70_v16 = vld [vmem:[%s660_s2 + $0x190] sm:$0xff]  ;;  %v65_v17 = vld [vmem:[%s660_s2 + $0x168] sm:$0xff]  ;;  %v67_v18 = vld [vmem:[%s660_s2 + $0x178] sm:$0xff] }
   0x7   :  { %138 = vmatpush1.msra.mxu0 %v72_v11  ;;  %215 = vmatpush1.msra.mxu1 %v74_v12  ;;  %v64_v19 = vld [vmem:[%s660_s2 + $0x160] sm:$0xff]  ;;  %v66_v20 = vld [vmem:[%s660_s2 + $0x170] sm:$0xff]  ;;  %v61_v21 = vld [vmem:[%s660_s2 + $0x148] sm:$0xff] }
   0x8   :  { %139 = vmatprep.subr.mxu0 %v69_v13  ;;  %216 = vmatprep.subr.mxu1 %v71_v14  ;;  %v63_v22 = vld [vmem:[%s660_s2 + $0x158] sm:$0xff]  ;;  %v60_v23 = vld [vmem:[%s660_s2 + $0x140] sm:$0xff]  ;;  %v62_v24 = vld [vmem:[%s660_s2 + $0x150] sm:$0xff] }
   0x9   :  { %140 = vmatpush1.msra.mxu0 %v68_v15  ;;  %217 = vmatpush1.msra.mxu1 %v70_v16  ;;  %v57_v25 = vld [vmem:[%s660_s2 + $0x128] sm:$0xff]  ;;  %v59_v26 = vld [vmem:[%s660_s2 + $0x138] sm:$0xff]  ;;  %v56_v27 = vld [vmem:[%s660_s2 + $0x120] sm:$0xff] }
   0xa   :  { %141 = vmatprep.subr.mxu0 %v65_v17  ;;  %218 = vmatprep.subr.mxu1 %v67_v18  ;;  %v58_v28 = vld [vmem:[%s660_s2 + $0x130] sm:$0xff]  ;;  %v53_v29 = vld [vmem:[%s660_s2 + $0x108] sm:$0xff]  ;;  %v55_v30 = vld [vmem:[%s660_s2 + $0x118] sm:$0xff] }
   0xb   :  { %142 = vmatpush1.msra.mxu0 %v64_v19  ;;  %219 = vmatpush1.msra.mxu1 %v66_v20  ;;  %v52_v31 = vld [vmem:[%s660_s2 + $0x100] sm:$0xff]  ;;  %v54_v32 = vld [vmem:[%s660_s2 + $0x110] sm:$0xff]  ;;  %v49_v33 = vld [vmem:[%s660_s2 + $0xe8] sm:$0xff] }
   0xc   :  { %143 = vmatprep.subr.mxu0 %v61_v21  ;;  %220 = vmatprep.subr.mxu1 %v63_v22  ;;  %v51_v34 = vld [vmem:[%s660_s2 + $0xf8] sm:$0xff]  ;;  %v48_v35 = vld [vmem:[%s660_s2 + $0xe0] sm:$0xff]  ;;  %v50_v36 = vld [vmem:[%s660_s2 + $0xf0] sm:$0xff] }
   0xd   :  { %144 = vmatpush1.msra.mxu0 %v60_v23  ;;  %221 = vmatpush1.msra.mxu1 %v62_v24  ;;  %v45_v37 = vld [vmem:[%s660_s2 + $0xc8] sm:$0xff]  ;;  %v47_v38 = vld [vmem:[%s660_s2 + $0xd8] sm:$0xff]  ;;  %v44_v39 = vld [vmem:[%s660_s2 + $0xc0] sm:$0xff] }
   0xe   :  { %145 = vmatprep.subr.mxu0 %v57_v25  ;;  %222 = vmatprep.subr.mxu1 %v59_v26  ;;  %v46_v40 = vld [vmem:[%s660_s2 + $0xd0] sm:$0xff]  ;;  %v41_v41 = vld [vmem:[%s660_s2 + $0xa8] sm:$0xff]  ;;  %v43_v42 = vld [vmem:[%s660_s2 + $0xb8] sm:$0xff] }
   0xf   :  { %146 = vmatpush1.msra.mxu0 %v56_v27  ;;  %223 = vmatpush1.msra.mxu1 %v58_v28  ;;  %v40_v43 = vld [vmem:[%s660_s2 + $0xa0] sm:$0xff]  ;;  %v42_v44 = vld [vmem:[%s660_s2 + $0xb0] sm:$0xff]  ;;  %v37_v45 = vld [vmem:[%s660_s2 + $0x88] sm:$0xff] }
  0x10   :  { %147 = vmatprep.subr.mxu0 %v53_v29  ;;  %224 = vmatprep.subr.mxu1 %v55_v30  ;;  %v39_v46 = vld [vmem:[%s660_s2 + $0x98] sm:$0xff]  ;;  %v36_v47 = vld [vmem:[%s660_s2 + $0x80] sm:$0xff]  ;;  %v38_v48 = vld [vmem:[%s660_s2 + $0x90] sm:$0xff] }
  0x11   :  { %148 = vmatpush1.msra.mxu0 %v52_v31  ;;  %225 = vmatpush1.msra.mxu1 %v54_v32  ;;  %v33_v49 = vld [vmem:[%s660_s2 + $0x68] sm:$0xff]  ;;  %v35_v50 = vld [vmem:[%s660_s2 + $0x78] sm:$0xff]  ;;  %v32_v51 = vld [vmem:[%s660_s2 + $0x60] sm:$0xff] }
  0x12   :  { %149 = vmatprep.subr.mxu0 %v49_v33  ;;  %226 = vmatprep.subr.mxu1 %v51_v34  ;;  %v34_v52 = vld [vmem:[%s660_s2 + $0x70] sm:$0xff]  ;;  %v29_v53 = vld [vmem:[%s660_s2 + $0x48] sm:$0xff]  ;;  %v31_v54 = vld [vmem:[%s660_s2 + $0x58] sm:$0xff] }
  0x13   :  { %150 = vmatpush1.msra.mxu0 %v48_v35  ;;  %227 = vmatpush1.msra.mxu1 %v50_v36  ;;  %v28_v55 = vld [vmem:[%s660_s2 + $0x40] sm:$0xff]  ;;  %v30_v56 = vld [vmem:[%s660_s2 + $0x50] sm:$0xff]  ;;  %v25_v57 = vld [vmem:[%s660_s2 + $0x28] sm:$0xff] }
  0x14   :  { %151 = vmatprep.subr.mxu0 %v45_v37  ;;  %228 = vmatprep.subr.mxu1 %v47_v38  ;;  %v27_v58 = vld [vmem:[%s660_s2 + $0x38] sm:$0xff]  ;;  %v24_v59 = vld [vmem:[%s660_s2 + $0x20] sm:$0xff]  ;;  %v26_v60 = vld [vmem:[%s660_s2 + $0x30] sm:$0xff] }
  0x15   :  { %152 = vmatpush1.msra.mxu0 %v44_v39  ;;  %229 = vmatpush1.msra.mxu1 %v46_v40  ;;  %v21_v61 = vld [vmem:[%s660_s2 + $0x8] sm:$0xff]  ;;  %v23_v62 = vld [vmem:[%s660_s2 + $0x18] sm:$0xff]  ;;  %v20_v63 = vld [vmem:[%s660_s2] sm:$0xff] }
  0x16   :  { %153 = vmatprep.subr.mxu0 %v41_v41  ;;  %230 = vmatprep.subr.mxu1 %v43_v42  ;;  %v22_v0 = vld [vmem:[%s660_s2 + $0x10] sm:$0xff]  ;;  %v113_v1 = vld [vmem:[%s660_s2 + $0x2e8] sm:$0xff]  ;;  %v115_v2 = vld [vmem:[%s660_s2 + $0x2f8] sm:$0xff] }
  0x17   :  { %154 = vmatpush1.msra.mxu0 %v40_v43  ;;  %231 = vmatpush1.msra.mxu1 %v42_v44  ;;  %v112_v3 = vld [vmem:[%s660_s2 + $0x2e0] sm:$0xff]  ;;  %v114_v4 = vld [vmem:[%s660_s2 + $0x2f0] sm:$0xff]  ;;  %v109_v5 = vld [vmem:[%s660_s2 + $0x2c8] sm:$0xff] }
  0x18   :  { %155 = vmatprep.subr.mxu0 %v37_v45  ;;  %232 = vmatprep.subr.mxu1 %v39_v46  ;;  %v111_v6 = vld [vmem:[%s660_s2 + $0x2d8] sm:$0xff]  ;;  %v108_v7 = vld [vmem:[%s660_s2 + $0x2c0] sm:$0xff]  ;;  %v110_v8 = vld [vmem:[%s660_s2 + $0x2d0] sm:$0xff] }
  0x19   :  { %156 = vmatpush1.msra.mxu0 %v36_v47  ;;  %233 = vmatpush1.msra.mxu1 %v38_v48  ;;  %v105_v9 = vld [vmem:[%s660_s2 + $0x2a8] sm:$0xff]  ;;  %v107_v10 = vld [vmem:[%s660_s2 + $0x2b8] sm:$0xff]  ;;  %v104_v11 = vld [vmem:[%s660_s2 + $0x2a0] sm:$0xff] }
  0x1a   :  { %157 = vmatprep.subr.mxu0 %v33_v49  ;;  %234 = vmatprep.subr.mxu1 %v35_v50  ;;  %v106_v12 = vld [vmem:[%s660_s2 + $0x2b0] sm:$0xff]  ;;  %v101_v13 = vld [vmem:[%s660_s2 + $0x288] sm:$0xff]  ;;  %v103_v14 = vld [vmem:[%s660_s2 + $0x298] sm:$0xff] }
  0x1b   :  { %158 = vmatpush1.msra.mxu0 %v32_v51  ;;  %235 = vmatpush1.msra.mxu1 %v34_v52  ;;  %v100_v15 = vld [vmem:[%s660_s2 + $0x280] sm:$0xff]  ;;  %v102_v16 = vld [vmem:[%s660_s2 + $0x290] sm:$0xff]  ;;  %v97_v17 = vld [vmem:[%s660_s2 + $0x268] sm:$0xff] }
  0x1c   :  { %159 = vmatprep.subr.mxu0 %v29_v53  ;;  %236 = vmatprep.subr.mxu1 %v31_v54  ;;  %v99_v18 = vld [vmem:[%s660_s2 + $0x278] sm:$0xff]  ;;  %v96_v19 = vld [vmem:[%s660_s2 + $0x260] sm:$0xff]  ;;  %v98_v20 = vld [vmem:[%s660_s2 + $0x270] sm:$0xff] }
  0x1d   :  { %160 = vmatpush1.msra.mxu0 %v28_v55  ;;  %237 = vmatpush1.msra.mxu1 %v30_v56  ;;  %v93_v21 = vld [vmem:[%s660_s2 + $0x248] sm:$0xff]  ;;  %v95_v22 = vld [vmem:[%s660_s2 + $0x258] sm:$0xff]  ;;  %v92_v23 = vld [vmem:[%s660_s2 + $0x240] sm:$0xff] }
  0x1e   :  { %161 = vmatprep.subr.mxu0 %v25_v57  ;;  %238 = vmatprep.subr.mxu1 %v27_v58  ;;  %v94_v24 = vld [vmem:[%s660_s2 + $0x250] sm:$0xff]  ;;  %v89_v25 = vld [vmem:[%s660_s2 + $0x228] sm:$0xff]  ;;  %v91_v26 = vld [vmem:[%s660_s2 + $0x238] sm:$0xff] }
  0x1f   :  { %162 = vmatpush1.msra.mxu0 %v24_v59  ;;  %239 = vmatpush1.msra.mxu1 %v26_v60  ;;  %v88_v27 = vld [vmem:[%s660_s2 + $0x220] sm:$0xff]  ;;  %v90_v28 = vld [vmem:[%s660_s2 + $0x230] sm:$0xff]  ;;  %v85_v29 = vld [vmem:[%s660_s2 + $0x208] sm:$0xff] }
  0x20   :  { %163 = vmatprep.subr.mxu0 %v21_v61  ;;  %240 = vmatprep.subr.mxu1 %v23_v62  ;;  %v87_v30 = vld [vmem:[%s660_s2 + $0x218] sm:$0xff]  ;;  %v84_v31 = vld [vmem:[%s660_s2 + $0x200] sm:$0xff]  ;;  %v15_v32 = vld [vmem:[%s661_s0 + $0x8] sm:$0xff] }
  0x21   :  { %164 = vmatpush1.msra.mxu0 %v20_v63  ;;  %241 = vmatpush1.msra.mxu1 %v22_v0  ;;  %v86_v33 = vld [vmem:[%s660_s2 + $0x210] sm:$0xff]  ;;  %v14_v34 = vld [vmem:[%s661_s0] sm:$0xff]  ;;  %v17_v35 = vld [vmem:[%s661_s0 + $0x18] sm:$0xf] }
  0x22   :  { %181 = vmatprep.subr.mxu0 %v113_v1  ;;  %258 = vmatprep.subr.mxu1 %v115_v2  ;;  %v18_v36 = vld [vmem:[%s662_s1] sm:$0xff]  ;;  %v16_v37 = vld [vmem:[%s661_s0 + $0x10] sm:$0xf]  ;;  %v19_v38 = vld [vmem:[%s662_s1 + $0x8] sm:$0xf] }
  0x23   :  { %182 = vmatpush2.msra.mxu0 %v112_v3  ;;  %259 = vmatpush2.msra.mxu1 %v114_v4 }
  0x24   :  { %183 = vmatprep.subr.mxu0 %v109_v5  ;;  %260 = vmatprep.subr.mxu1 %v111_v6 }
  0x25   :  { %184 = vmatpush2.msra.mxu0 %v108_v7  ;;  %261 = vmatpush2.msra.mxu1 %v110_v8 }
  0x26   :  { %185 = vmatprep.subr.mxu0 %v105_v9  ;;  %262 = vmatprep.subr.mxu1 %v107_v10 }
  0x27   :  { %186 = vmatpush2.msra.mxu0 %v104_v11  ;;  %263 = vmatpush2.msra.mxu1 %v106_v12 }
  0x28   :  { %187 = vmatprep.subr.mxu0 %v101_v13  ;;  %264 = vmatprep.subr.mxu1 %v103_v14 }
  0x29   :  { %188 = vmatpush2.msra.mxu0 %v100_v15  ;;  %265 = vmatpush2.msra.mxu1 %v102_v16 }
  0x2a   :  { %189 = vmatprep.subr.mxu0 %v97_v17  ;;  %266 = vmatprep.subr.mxu1 %v99_v18 }
  0x2b   :  { %190 = vmatpush2.msra.mxu0 %v96_v19  ;;  %267 = vmatpush2.msra.mxu1 %v98_v20 }
  0x2c   :  { %191 = vmatprep.subr.mxu0 %v93_v21  ;;  %268 = vmatprep.subr.mxu1 %v95_v22 }
  0x2d   :  { %192 = vmatpush2.msra.mxu0 %v92_v23  ;;  %269 = vmatpush2.msra.mxu1 %v94_v24 }
  0x2e   :  { %193 = vmatprep.subr.mxu0 %v89_v25  ;;  %270 = vmatprep.subr.mxu1 %v91_v26 }
  0x2f   :  { %194 = vmatpush2.msra.mxu0 %v88_v27  ;;  %271 = vmatpush2.msra.mxu1 %v90_v28 }
  0x30   :  { %195 = vmatprep.subr.mxu0 %v85_v29  ;;  %272 = vmatprep.subr.mxu1 %v87_v30 }
  0x31   :  { %196 = vmatpush2.msra.mxu0 %v84_v31  ;;  %299 = vmatprep.mubr.msk.f32.mxu0 %vm126_vm0, %v15_v32 }
  0x32   :  { %273 = vmatpush2.msra.mxu1 %v86_v33  ;;  %301 = vmatprep.mubr.msk.f32.mxu1 %vm126_vm0, %v15_v32 }
  0x33   :  { %198 = vmatmul.mubr.f32.vlgmr.msra.gmra.mxu0 %v14_v34  ;;  %275 = vmatmul.mubr.f32.vlgmr.msra.gmra.mxu1 %v14_v34 }
  0x34   :  { %300 = vmatprep.mubr.msk.f32.mxu0 %vm126_vm0, %v17_v35  ;;  %302 = vmatprep.mubr.msk.f32.mxu1 %vm126_vm0, %v17_v35 }
  0x35   :  { %118 = vperm.xlu0 %304, %v18_v36  }
  0x37   :  { %204 = vmatmul.mubr.f32.gmra.mxu0 %v16_v37  ;;  %281 = vmatmul.mubr.f32.gmra.mxu1 %v16_v37 }
  0x39   :  { %123 = vperm.xlu0 %304, %v19_v38  }
  0xb0   :  { %v119_v39 = vpop.permute.xlu0 %118 }
  0xb4   :  { %v124_v46 = vpop.permute.xlu0 %123 }
  0xf3   :  { %v199_v40 = vpop.f32.mrf.mxu0  ;;  %v276_v41 = vpop.f32.mrf.mxu1 }
  0xf4   :  { %v200_v42 = vadd.f32 %v199_v40, %v119_v39  ;;  %v277_v43 = vadd.f32 %v276_v41, %v119_v39 }
  0xf5   :  { %v201_v44 = vpop.f32.mrf.mxu0  ;;  %v278_v45 = vpop.f32.mrf.mxu1 }
  0xf6   :  { %287 = vst [vmem:[%s663_s3] sm:$0xff] %v200_v42  ;;  %289 = vst [vmem:[%s663_s3 + $0x10] sm:$0xff] %v277_v43  ;;  %v202_v47 = vadd.f32 %v201_v44, %v119_v39  ;;  %v279_v48 = vadd.f32 %v278_v45, %v119_v39 }
  0xf7   :  { %v205_v49 = vpop.f32.mrf.mxu0  ;;  %v282_v50 = vpop.f32.mrf.mxu1 }
  0xf8   :  { %288 = vst [vmem:[%s663_s3 + $0x8] sm:$0xff] %v202_v47  ;;  %290 = vst [vmem:[%s663_s3 + $0x18] sm:$0xff] %v279_v48  ;;  %v206_v51 = vadd.f32 %v205_v49, %v124_v46  ;;  %v283_v52 = vadd.f32 %v282_v50, %v124_v46 }
  0xf9   :  { %v207_v53 = vpop.f32.mrf.mxu0  ;;  %v284_v54 = vpop.f32.mrf.mxu1 }
  0xfa   :  { %291 = vst [vmem:[%s663_s3 + $0x20] sm:$0xf] %v206_v51  ;;  %293 = vst [vmem:[%s663_s3 + $0x30] sm:$0xf] %v283_v52  ;;  %v208_v55 = vadd.f32 %v207_v53, %v124_v46  ;;  %v285_v56 = vadd.f32 %v284_v54, %v124_v46 }
  0xfc   :  { %292 = vst [vmem:[%s663_s3 + $0x28] sm:$0xf] %v208_v55  ;;  %294 = vst [vmem:[%s663_s3 + $0x38] sm:$0xf] %v285_v56 }

</bundles_post_ra>
